<compile_context>
chip_gen: v5e
topology: v5e:2x2
jax: 0.10.0
libtpu: 0.0.40
codegen_flags: <defaults>
</compile_context>

<pallas_src>
import functools

import jax
import jax.numpy as jnp
from jax.experimental import pallas as pl
from jax.experimental.pallas import tpu as pltpu

IN_CHANNELS = 4
OUT_CHANNELS = 32
K = 3
NUM_NODES = 16
BATCH = 2
SEQ_LEN = 8


# ----------------------------- Pallas kernel --------------------------------
def _cheb_stack(L, feat, k_order):
    """[T_0(L)feat, T_1(L)feat, ..., T_{K-1}(L)feat] via the Chebyshev recursion."""
    ts = [feat]                                                           # T_0
    if k_order > 1:
        ts.append(jnp.dot(L, feat, preferred_element_type=jnp.float32))  # T_1 = L X
    for _ in range(2, k_order):
        ts.append(2.0 * jnp.dot(L, ts[-1], preferred_element_type=jnp.float32) - ts[-2])
    return ts


def gconv_gru_kernel(L_ref, x_ref, h0_ref, w_zr_ref, b_zr_ref, w_h_ref, b_h_ref,
                     h_out_ref, h_state, *, k_order, f_out):
    t = pl.program_id(1)

    # Start of a new graph's sequence: load the initial hidden state into the carry.
    @pl.when(t == 0)
    def _():
        h_state[...] = h0_ref[...]

    L = L_ref[...]          # (N, N)
    X = x_ref[...]          # (N, F_in)
    H = h_state[...]        # (N, F_out)

    def conv(ts, w_ref, b_ref):
        # Per-k matmul accumulation against pre-packed slabs (no wide lane concat).
        acc = jnp.dot(ts[0], w_ref[0], preferred_element_type=jnp.float32)
        for k in range(1, k_order):
            acc = acc + jnp.dot(ts[k], w_ref[k], preferred_element_type=jnp.float32)
        return acc + b_ref[...]

    # Fused Chebyshev recursion over [H | X] (H first: lane offsets 0 / f_out, 8-aligned).
    t_zr = _cheb_stack(L, jnp.concatenate([H, X], axis=1), k_order)   # K x (N, F_out+F_in)
    ZR = jax.nn.sigmoid(conv(t_zr, w_zr_ref, b_zr_ref))               # (N, 2*F_out)
    Z = ZR[:, :f_out]
    R = ZR[:, f_out:]

    # Candidate state: fresh recursion over [H*R | X] (X part is duplicated work but the
    # MXU has enormous slack at these widths and it avoids narrow 4-lane slices/matmuls).
    t_h = _cheb_stack(L, jnp.concatenate([H * R, X], axis=1), k_order)
    H_tilde = jnp.tanh(conv(t_h, w_h_ref, b_h_ref))                   # (N, F_out)

    # GRU blend: H_tilde + Z*(H - H_tilde) == Z*H + (1-Z)*H_tilde (one fewer vmul).
    H_new = H_tilde + Z * (H - H_tilde)
    h_state[...] = H_new
    h_out_ref[...] = H_new


# ------------------------------- JAX glue ------------------------------------
def scaled_laplacian(edge_index, edge_weight, num_nodes, lambda_max=2.0):
    """Dense L_hat = 2/lambda_max * (I - D^-1/2 A D^-1/2) - I (sym normalization)."""
    row, col = edge_index
    A = jnp.zeros((num_nodes, num_nodes), jnp.float32).at[row, col].add(edge_weight)
    deg = A.sum(axis=1)
    dinv = jnp.where(deg > 0, jax.lax.rsqrt(deg), 0.0)
    eye = jnp.eye(num_nodes, dtype=jnp.float32)
    L = eye - dinv[:, None] * A * dinv[None, :]
    return (2.0 / lambda_max) * L - eye


def init_params(key):
    names_in = {
        "xz": IN_CHANNELS, "hz": OUT_CHANNELS,
        "xr": IN_CHANNELS, "hr": OUT_CHANNELS,
        "xh": IN_CHANNELS, "hh": OUT_CHANNELS,
    }
    params = {}
    keys = jax.random.split(key, len(names_in))
    for (name, fin), k in zip(names_in.items(), keys):
        scale = 1.0 / jnp.sqrt(jnp.float32(fin * K))
        params[f"w_{name}"] = scale * jax.random.normal(
            k, (K, fin, OUT_CHANNELS), jnp.float32)
        params[f"b_{name}"] = jnp.zeros((1, OUT_CHANNELS), jnp.float32) + 0.01
    return params


def pack_params(params):
    """Pack per-gate Chebyshev weights into per-k slabs matching the kernel's [H | X]
    feature stacking (H rows first), and fold the x-/h-side biases into one per gate.

      w_zr[k] = [[w_hz[k] | w_hr[k]],    rows 0..F_out-1        (H side)
                 [w_xz[k] | w_xr[k]]]    rows F_out..F_out+F_in (X side)
      w_h [k] = [[w_hh[k]], [w_xh[k]]]
    """
    w_zr = jnp.concatenate(
        [jnp.concatenate([params["w_hz"], params["w_hr"]], axis=2),   # (K, F_out, 2F_out)
         jnp.concatenate([params["w_xz"], params["w_xr"]], axis=2)],  # (K, F_in , 2F_out)
        axis=1)                                                       # (K, F_out+F_in, 2F_out)
    w_h = jnp.concatenate([params["w_hh"], params["w_xh"]], axis=1)   # (K, F_out+F_in, F_out)
    b_zr = jnp.concatenate([params["b_xz"] + params["b_hz"],
                            params["b_xr"] + params["b_hr"]], axis=1)  # (1, 2F_out)
    b_h = params["b_xh"] + params["b_hh"]                              # (1, F_out)
    return w_zr, b_zr, w_h, b_h


def gconv_gru_forward(params, X_seq, edge_index, edge_weight, H0=None, lambda_max=2.0):
    """Run the GConvGRU cell over B independent graphs and T timesteps in ONE pallas_call.

    X_seq: (B, T, N, F_in); edge_weight: (B, E) (edge_index shared); H0: (B, N, F_out).
    Returns the full hidden-state sequence (B, T, N, F_out). T=1 reproduces the module's
    single-step forward.
    """
    B, T, n, f_in = X_seq.shape
    f_out = OUT_CHANNELS
    if H0 is None:
        H0 = jnp.zeros((B, n, f_out), jnp.float32)
    L = jax.vmap(lambda w: scaled_laplacian(edge_index, w, n, lambda_max))(edge_weight)
    w_zr, b_zr, w_h, b_h = pack_params(params)

    f_cat = f_out + f_in
    # Advisory cost hint so XLA does not treat the tiny fused kernel as expensive.
    flops = B * T * (2 * (K - 1) * 2 * n * n * f_cat            # two Chebyshev recursions
                     + 2 * K * n * f_cat * (3 * f_out))         # gate + candidate matmuls
    transcendentals = B * T * n * 3 * f_out                     # sigmoid (2*F_out) + tanh
    bytes_accessed = 4 * (L.size + X_seq.size + H0.size + w_zr.size + b_zr.size
                          + w_h.size + b_h.size + B * T * n * f_out)

    kernel = functools.partial(gconv_gru_kernel, k_order=K, f_out=f_out)
    return pl.pallas_call(
        kernel,
        out_shape=jax.ShapeDtypeStruct((B, T, n, f_out), jnp.float32),
        grid=(B, T),
        in_specs=[
            # Constant along t -> stays VMEM-resident, not re-DMA'd per step.
            pl.BlockSpec((None, n, n), lambda b, t: (b, 0, 0)),          # L
            pl.BlockSpec((None, None, n, f_in), lambda b, t: (b, t, 0, 0)),   # X[t]
            pl.BlockSpec((None, n, f_out), lambda b, t: (b, 0, 0)),      # H0
            pl.BlockSpec((K, f_cat, 2 * f_out), lambda b, t: (0, 0, 0)),  # W_zr
            pl.BlockSpec((1, 2 * f_out), lambda b, t: (0, 0)),            # b_zr
            pl.BlockSpec((K, f_cat, f_out), lambda b, t: (0, 0, 0)),      # W_h
            pl.BlockSpec((1, f_out), lambda b, t: (0, 0)),                # b_h
        ],
        out_specs=pl.BlockSpec((None, None, n, f_out), lambda b, t: (b, t, 0, 0)),
        scratch_shapes=[pltpu.VMEM((n, f_out), jnp.float32)],   # H carried across t
        compiler_params=pltpu.CompilerParams(
            dimension_semantics=("parallel", "arbitrary")),
        cost_estimate=pl.CostEstimate(flops=flops,
                                      transcendentals=transcendentals,
                                      bytes_accessed=bytes_accessed),
    )(L, X_seq, H0, w_zr, b_zr, w_h, b_h)


# --------------------------- pure-JAX reference -------------------------------
def _cheb_conv_ref(L, feat, W, b):
    txs = [feat]
    if K > 1:
        txs.append(L @ feat)
    for _ in range(2, K):
        txs.append(2.0 * (L @ txs[-1]) - txs[-2])
    return sum(t @ W[k] for k, t in enumerate(txs)) + b


def gconv_gru_cell_ref(params, L, X, H):
    Z = jax.nn.sigmoid(_cheb_conv_ref(L, X, params["w_xz"], params["b_xz"])
                       + _cheb_conv_ref(L, H, params["w_hz"], params["b_hz"]))
    R = jax.nn.sigmoid(_cheb_conv_ref(L, X, params["w_xr"], params["b_xr"])
                       + _cheb_conv_ref(L, H, params["w_hr"], params["b_hr"]))
    H_tilde = jnp.tanh(_cheb_conv_ref(L, X, params["w_xh"], params["b_xh"])
                       + _cheb_conv_ref(L, H * R, params["w_hh"], params["b_hh"]))
    return Z * H + (1.0 - Z) * H_tilde


def gconv_gru_seq_ref(params, L, X_seq, H0):
    def step(H, X):
        Hn = gconv_gru_cell_ref(params, L, X, H)
        return Hn, Hn
    _, Hs = jax.lax.scan(step, H0, X_seq)
    return Hs                                # (T, N, F_out)


# ---------------------------------- main --------------------------------------
if __name__ == "__main__":
    key = jax.random.PRNGKey(0)
    k_x, k_w, k_h, k_p = jax.random.split(key, 4)

    B, T, n = BATCH, SEQ_LEN, NUM_NODES

    # Ring graph over n nodes (bidirectional edges), per-graph edge weights.
    src = jnp.arange(n, dtype=jnp.int32)
    dst = (src + 1) % n
    edge_index = jnp.stack([jnp.concatenate([src, dst]),
                            jnp.concatenate([dst, src])], axis=0)          # (2, 2N)
    edge_weight = jax.random.uniform(k_w, (B, 2 * n), jnp.float32,
                                     minval=0.5, maxval=1.5)

    X = jax.random.normal(k_x, (B, T, n, IN_CHANNELS), jnp.float32)
    H0 = jax.random.normal(k_h, (B, n, OUT_CHANNELS), jnp.float32)
    params = init_params(k_p)

    h_seq = gconv_gru_forward(params, X, edge_index, edge_weight, H0)
    h_seq = jax.block_until_ready(h_seq)
    assert h_seq.shape == (B, T, n, OUT_CHANNELS)

    h_ref = jnp.stack(
        [gconv_gru_seq_ref(params,
                           scaled_laplacian(edge_index, edge_weight[b], n),
                           X[b], H0[b])
         for b in range(B)], axis=0)

    assert jnp.allclose(h_seq, h_ref, atol=1e-4, rtol=1e-4), "mismatch vs JAX reference"
    print("KERNEL_OK")
</pallas_src>

<mosaic_0001>
module attributes {stable_mosaic.version = 11 : i64} {
  func.func @gconv_gru_kernel(%arg0: i32, %arg1: i32, %arg2: memref<1x16x16xf32, #tpu.memory_space<vmem>>, %arg3: memref<1x1x16x4xf32, #tpu.memory_space<vmem>>, %arg4: memref<1x16x32xf32, #tpu.memory_space<vmem>>, %arg5: memref<3x36x64xf32, #tpu.memory_space<vmem>>, %arg6: memref<1x64xf32, #tpu.memory_space<vmem>>, %arg7: memref<3x36x32xf32, #tpu.memory_space<vmem>>, %arg8: memref<1x32xf32, #tpu.memory_space<vmem>>, %arg9: memref<1x1x16x32xf32, #tpu.memory_space<vmem>>, %arg10: memref<16x32xf32, #tpu.memory_space<vmem>>) attributes {dimension_semantics = [#tpu.dimension_semantics<parallel>, #tpu.dimension_semantics<arbitrary>], iteration_bounds = array<i64: 2, 8>, scalar_prefetch = 0 : i64, scratch_operands = 1 : i64, tpu.core_type = #tpu.core_type<tc>, window_params = [{transform_indices = @transform_0, window_bounds = array<i64: 1, 16, 16>}, {transform_indices = @transform_1, window_bounds = array<i64: 1, 1, 16, 4>}, {transform_indices = @transform_2, window_bounds = array<i64: 1, 16, 32>}, {pipeline_mode = #tpu.pipeline_mode<synchronous>, transform_indices = @transform_3, window_bounds = array<i64: 3, 36, 64>}, {pipeline_mode = #tpu.pipeline_mode<synchronous>, transform_indices = @transform_4, window_bounds = array<i64: 1, 64>}, {pipeline_mode = #tpu.pipeline_mode<synchronous>, transform_indices = @transform_5, window_bounds = array<i64: 3, 36, 32>}, {pipeline_mode = #tpu.pipeline_mode<synchronous>, transform_indices = @transform_6, window_bounds = array<i64: 1, 32>}, {transform_indices = @transform_7, window_bounds = array<i64: 1, 1, 16, 32>}]} {
    %c0_i32 = arith.constant 0 : i32
    %0 = arith.cmpi eq, %arg1, %c0_i32 : i32
    %1 = arith.extui %0 : i1 to i32
    %c0_i32_0 = arith.constant 0 : i32
    %2 = arith.cmpi ne, %1, %c0_i32_0 : i32
    scf.if %2 {
      %c0_47 = arith.constant 0 : index
      %c0_48 = arith.constant 0 : index
      %c0_49 = arith.constant 0 : index
      %64 = vector.load %arg4[%c0_47, %c0_48, %c0_49] : memref<1x16x32xf32, #tpu.memory_space<vmem>>, vector<1x16x32xf32>
      %65 = vector.shape_cast %64 : vector<1x16x32xf32> to vector<16x32xf32>
      %c0_50 = arith.constant 0 : index
      %c0_51 = arith.constant 0 : index
      %66 = vector.load %arg10[%c0_50, %c0_51] : memref<16x32xf32, #tpu.memory_space<vmem>>, vector<16x32xf32>
      tpu.vector_store %arg10[%c0_50, %c0_51], %65 {strides = array<i32>} : memref<16x32xf32, #tpu.memory_space<vmem>>, vector<16x32xf32>,
    } else {
    }
    %c0 = arith.constant 0 : index
    %c0_1 = arith.constant 0 : index
    %c0_2 = arith.constant 0 : index
    %3 = vector.load %arg2[%c0, %c0_1, %c0_2] : memref<1x16x16xf32, #tpu.memory_space<vmem>>, vector<1x16x16xf32>
    %4 = vector.shape_cast %3 : vector<1x16x16xf32> to vector<16x16xf32>
    %c0_3 = arith.constant 0 : index
    %c0_4 = arith.constant 0 : index
    %c0_5 = arith.constant 0 : index
    %c0_6 = arith.constant 0 : index
    %5 = vector.load %arg3[%c0_3, %c0_4, %c0_5, %c0_6] : memref<1x1x16x4xf32, #tpu.memory_space<vmem>>, vector<1x1x16x4xf32>
    %6 = vector.shape_cast %5 : vector<1x1x16x4xf32> to vector<16x4xf32>
    %c0_7 = arith.constant 0 : index
    %c0_8 = arith.constant 0 : index
    %7 = vector.load %arg10[%c0_7, %c0_8] : memref<16x32xf32, #tpu.memory_space<vmem>>, vector<16x32xf32>
    %8 = tpu.concatenate %7, %6 in 1 : vector<16x32xf32>, vector<16x4xf32> -> vector<16x36xf32>
    %cst = arith.constant dense<0.000000e+00> : vector<16x36xf32>
    %9 = tpu.matmul %4, %8, %cst {dimension_numbers = #tpu.dot_dimension_numbers<[1], [0], [0], [1], [0, 0, 1, 1], [], []>} : vector<16x16xf32>, vector<16x36xf32>, vector<16x36xf32> -> vector<16x36xf32>
    %cst_9 = arith.constant dense<0.000000e+00> : vector<16x36xf32>
    %10 = tpu.matmul %4, %9, %cst_9 {dimension_numbers = #tpu.dot_dimension_numbers<[1], [0], [0], [1], [0, 0, 1, 1], [], []>} : vector<16x16xf32>, vector<16x36xf32>, vector<16x36xf32> -> vector<16x36xf32>
    %cst_10 = arith.constant 2.000000e+00 : f32
    %11 = vector.broadcast %cst_10 : f32 to vector<16x36xf32>
    %12 = arith.mulf %11, %10 : vector<16x36xf32>
    %13 = arith.subf %12, %8 : vector<16x36xf32>
    %c0_11 = arith.constant 0 : index
    %c0_12 = arith.constant 0 : index
    %c0_13 = arith.constant 0 : index
    %14 = vector.load %arg5[%c0_11, %c0_12, %c0_13] : memref<3x36x64xf32, #tpu.memory_space<vmem>>, vector<1x36x64xf32>
    %15 = vector.shape_cast %14 : vector<1x36x64xf32> to vector<36x64xf32>
    %cst_14 = arith.constant dense<0.000000e+00> : vector<16x64xf32>
    %16 = tpu.matmul %8, %15, %cst_14 {dimension_numbers = #tpu.dot_dimension_numbers<[1], [0], [0], [1], [0, 0, 1, 1], [], []>} : vector<16x36xf32>, vector<36x64xf32>, vector<16x64xf32> -> vector<16x64xf32>
    %c1 = arith.constant 1 : index
    %c0_15 = arith.constant 0 : index
    %c0_16 = arith.constant 0 : index
    %17 = vector.load %arg5[%c1, %c0_15, %c0_16] : memref<3x36x64xf32, #tpu.memory_space<vmem>>, vector<1x36x64xf32>
    %18 = vector.shape_cast %17 : vector<1x36x64xf32> to vector<36x64xf32>
    %cst_17 = arith.constant dense<0.000000e+00> : vector<16x64xf32>
    %19 = tpu.matmul %9, %18, %cst_17 {dimension_numbers = #tpu.dot_dimension_numbers<[1], [0], [0], [1], [0, 0, 1, 1], [], []>} : vector<16x36xf32>, vector<36x64xf32>, vector<16x64xf32> -> vector<16x64xf32>
    %20 = arith.addf %16, %19 : vector<16x64xf32>
    %c2 = arith.constant 2 : index
    %c0_18 = arith.constant 0 : index
    %c0_19 = arith.constant 0 : index
    %21 = vector.load %arg5[%c2, %c0_18, %c0_19] : memref<3x36x64xf32, #tpu.memory_space<vmem>>, vector<1x36x64xf32>
    %22 = vector.shape_cast %21 : vector<1x36x64xf32> to vector<36x64xf32>
    %cst_20 = arith.constant dense<0.000000e+00> : vector<16x64xf32>
    %23 = tpu.matmul %13, %22, %cst_20 {dimension_numbers = #tpu.dot_dimension_numbers<[1], [0], [0], [1], [0, 0, 1, 1], [], []>} : vector<16x36xf32>, vector<36x64xf32>, vector<16x64xf32> -> vector<16x64xf32>
    %24 = arith.addf %20, %23 : vector<16x64xf32>
    %c0_21 = arith.constant 0 : index
    %c0_22 = arith.constant 0 : index
    %25 = vector.load %arg6[%c0_21, %c0_22] : memref<1x64xf32, #tpu.memory_space<vmem>>, vector<1x64xf32>
    %26 = vector.broadcast %25 : vector<1x64xf32> to vector<16x64xf32>
    %27 = arith.addf %24, %26 : vector<16x64xf32>
    %28 = arith.negf %27 : vector<16x64xf32>
    %29 = math.exp %28 : vector<16x64xf32>
    %cst_23 = arith.constant 1.000000e+00 : f32
    %30 = vector.broadcast %cst_23 : f32 to vector<16x64xf32>
    %31 = arith.addf %30, %29 : vector<16x64xf32>
    %32 = arith.divf %30, %31 : vector<16x64xf32>
    %33 = vector.extract_strided_slice %32 {offsets = [0, 0], sizes = [16, 32], strides = [1, 1]} : vector<16x64xf32> to vector<16x32xf32>
    %34 = vector.extract_strided_slice %32 {offsets = [0, 32], sizes = [16, 32], strides = [1, 1]} : vector<16x64xf32> to vector<16x32xf32>
    %35 = arith.mulf %7, %34 : vector<16x32xf32>
    %36 = tpu.concatenate %35, %6 in 1 : vector<16x32xf32>, vector<16x4xf32> -> vector<16x36xf32>
    %cst_24 = arith.constant dense<0.000000e+00> : vector<16x36xf32>
    %37 = tpu.matmul %4, %36, %cst_24 {dimension_numbers = #tpu.dot_dimension_numbers<[1], [0], [0], [1], [0, 0, 1, 1], [], []>} : vector<16x16xf32>, vector<16x36xf32>, vector<16x36xf32> -> vector<16x36xf32>
    %cst_25 = arith.constant dense<0.000000e+00> : vector<16x36xf32>
    %38 = tpu.matmul %4, %37, %cst_25 {dimension_numbers = #tpu.dot_dimension_numbers<[1], [0], [0], [1], [0, 0, 1, 1], [], []>} : vector<16x16xf32>, vector<16x36xf32>, vector<16x36xf32> -> vector<16x36xf32>
    %cst_26 = arith.constant 2.000000e+00 : f32
    %39 = vector.broadcast %cst_26 : f32 to vector<16x36xf32>
    %40 = arith.mulf %39, %38 : vector<16x36xf32>
    %41 = arith.subf %40, %36 : vector<16x36xf32>
    %c0_27 = arith.constant 0 : index
    %c0_28 = arith.constant 0 : index
    %c0_29 = arith.constant 0 : index
    %42 = vector.load %arg7[%c0_27, %c0_28, %c0_29] : memref<3x36x32xf32, #tpu.memory_space<vmem>>, vector<1x36x32xf32>
    %43 = vector.shape_cast %42 : vector<1x36x32xf32> to vector<36x32xf32>
    %cst_30 = arith.constant dense<0.000000e+00> : vector<16x32xf32>
    %44 = tpu.matmul %36, %43, %cst_30 {dimension_numbers = #tpu.dot_dimension_numbers<[1], [0], [0], [1], [0, 0, 1, 1], [], []>} : vector<16x36xf32>, vector<36x32xf32>, vector<16x32xf32> -> vector<16x32xf32>
    %c1_31 = arith.constant 1 : index
    %c0_32 = arith.constant 0 : index
    %c0_33 = arith.constant 0 : index
    %45 = vector.load %arg7[%c1_31, %c0_32, %c0_33] : memref<3x36x32xf32, #tpu.memory_space<vmem>>, vector<1x36x32xf32>
    %46 = vector.shape_cast %45 : vector<1x36x32xf32> to vector<36x32xf32>
    %cst_34 = arith.constant dense<0.000000e+00> : vector<16x32xf32>
    %47 = tpu.matmul %37, %46, %cst_34 {dimension_numbers = #tpu.dot_dimension_numbers<[1], [0], [0], [1], [0, 0, 1, 1], [], []>} : vector<16x36xf32>, vector<36x32xf32>, vector<16x32xf32> -> vector<16x32xf32>
    %48 = arith.addf %44, %47 : vector<16x32xf32>
    %c2_35 = arith.constant 2 : index
    %c0_36 = arith.constant 0 : index
    %c0_37 = arith.constant 0 : index
    %49 = vector.load %arg7[%c2_35, %c0_36, %c0_37] : memref<3x36x32xf32, #tpu.memory_space<vmem>>, vector<1x36x32xf32>
    %50 = vector.shape_cast %49 : vector<1x36x32xf32> to vector<36x32xf32>
    %cst_38 = arith.constant dense<0.000000e+00> : vector<16x32xf32>
    %51 = tpu.matmul %41, %50, %cst_38 {dimension_numbers = #tpu.dot_dimension_numbers<[1], [0], [0], [1], [0, 0, 1, 1], [], []>} : vector<16x36xf32>, vector<36x32xf32>, vector<16x32xf32> -> vector<16x32xf32>
    %52 = arith.addf %48, %51 : vector<16x32xf32>
    %c0_39 = arith.constant 0 : index
    %c0_40 = arith.constant 0 : index
    %53 = vector.load %arg8[%c0_39, %c0_40] : memref<1x32xf32, #tpu.memory_space<vmem>>, vector<1x32xf32>
    %54 = vector.broadcast %53 : vector<1x32xf32> to vector<16x32xf32>
    %55 = arith.addf %52, %54 : vector<16x32xf32>
    %56 = math.tanh %55 : vector<16x32xf32>
    %57 = arith.subf %7, %56 : vector<16x32xf32>
    %58 = arith.mulf %33, %57 : vector<16x32xf32>
    %59 = arith.addf %56, %58 : vector<16x32xf32>
    %c0_41 = arith.constant 0 : index
    %c0_42 = arith.constant 0 : index
    %60 = vector.load %arg10[%c0_41, %c0_42] : memref<16x32xf32, #tpu.memory_space<vmem>>, vector<16x32xf32>
    tpu.vector_store %arg10[%c0_41, %c0_42], %59 {strides = array<i32>} : memref<16x32xf32, #tpu.memory_space<vmem>>, vector<16x32xf32>,
    %c0_43 = arith.constant 0 : index
    %c0_44 = arith.constant 0 : index
    %c0_45 = arith.constant 0 : index
    %c0_46 = arith.constant 0 : index
    %61 = vector.load %arg9[%c0_43, %c0_44, %c0_45, %c0_46] : memref<1x1x16x32xf32, #tpu.memory_space<vmem>>, vector<1x1x16x32xf32>
    %62 = vector.shape_cast %61 : vector<1x1x16x32xf32> to vector<16x32xf32>
    %63 = vector.shape_cast %59 : vector<16x32xf32> to vector<1x1x16x32xf32>
    tpu.vector_store %arg9[%c0_43, %c0_44, %c0_45, %c0_46], %63 {strides = array<i32>} : memref<1x1x16x32xf32, #tpu.memory_space<vmem>>, vector<1x1x16x32xf32>,
    return
  }
  func.func @transform_0(%arg0: i32, %arg1: i32) -> (i32, i32, i32) {
    %c0_i32 = arith.constant 0 : i32
    %c0_i32_0 = arith.constant 0 : i32
    %c0_i32_1 = arith.constant 0 : i32
    return %arg0, %c0_i32, %c0_i32_0 : i32, i32, i32
  }
  func.func @transform_1(%arg0: i32, %arg1: i32) -> (i32, i32, i32, i32) {
    %c0_i32 = arith.constant 0 : i32
    %c0_i32_0 = arith.constant 0 : i32
    %c0_i32_1 = arith.constant 0 : i32
    return %arg0, %arg1, %c0_i32, %c0_i32_0 : i32, i32, i32, i32
  }
  func.func @transform_2(%arg0: i32, %arg1: i32) -> (i32, i32, i32) {
    %c0_i32 = arith.constant 0 : i32
    %c0_i32_0 = arith.constant 0 : i32
    %c0_i32_1 = arith.constant 0 : i32
    return %arg0, %c0_i32, %c0_i32_0 : i32, i32, i32
  }
  func.func @transform_3(%arg0: i32, %arg1: i32) -> (i32, i32, i32) {
    %c0_i32 = arith.constant 0 : i32
    %c0_i32_0 = arith.constant 0 : i32
    %c0_i32_1 = arith.constant 0 : i32
    %c0_i32_2 = arith.constant 0 : i32
    return %c0_i32, %c0_i32_0, %c0_i32_1 : i32, i32, i32
  }
  func.func @transform_4(%arg0: i32, %arg1: i32) -> (i32, i32) {
    %c0_i32 = arith.constant 0 : i32
    %c0_i32_0 = arith.constant 0 : i32
    %c0_i32_1 = arith.constant 0 : i32
    return %c0_i32, %c0_i32_0 : i32, i32
  }
  func.func @transform_5(%arg0: i32, %arg1: i32) -> (i32, i32, i32) {
    %c0_i32 = arith.constant 0 : i32
    %c0_i32_0 = arith.constant 0 : i32
    %c0_i32_1 = arith.constant 0 : i32
    %c0_i32_2 = arith.constant 0 : i32
    return %c0_i32, %c0_i32_0, %c0_i32_1 : i32, i32, i32
  }
  func.func @transform_6(%arg0: i32, %arg1: i32) -> (i32, i32) {
    %c0_i32 = arith.constant 0 : i32
    %c0_i32_0 = arith.constant 0 : i32
    %c0_i32_1 = arith.constant 0 : i32
    return %c0_i32, %c0_i32_0 : i32, i32
  }
  func.func @transform_7(%arg0: i32, %arg1: i32) -> (i32, i32, i32, i32) {
    %c0_i32 = arith.constant 0 : i32
    %c0_i32_0 = arith.constant 0 : i32
    %c0_i32_1 = arith.constant 0 : i32
    return %arg0, %arg1, %c0_i32, %c0_i32_0 : i32, i32, i32, i32
  }
}

</mosaic_0001>

<bundles_post_ra>
// kernel: tpu_custom_call.1
= control target key start
LH: loop header
LB: loop body
LE: loop exit
PB: predicated region body
PF: predicated region fallthrough
CT: control target
= control target key end

     0   :  { %12 = vsyncpa [#allocation4], 0  ;;  %s1528_s0 = inlined_call_operand.vmem [shape: f32[2,16,16], index: 0, kind: input, shape index: {}]   ;;  %s1529_s1 = inlined_call_operand.vmem [shape: f32[2,8,16,4], index: 1, kind: input, shape index: {}]   ;;  %s1530_s2 = inlined_call_operand.vmem [shape: f32[2,16,32], index: 2, kind: input, shape index: {}]   ;;  %s1531_s3 = inlined_call_operand.vmem [shape: f32[3,36,64], index: 3, kind: input, shape index: {}]   ;;  %s1532_s4 = inlined_call_operand.vmem [shape: f32[1,64], index: 4, kind: input, shape index: {}]   ;;  %s1533_s5 = inlined_call_operand.vmem [shape: f32[3,36,32], index: 5, kind: input, shape index: {}]   ;;  %s1534_s6 = inlined_call_operand.vmem [shape: f32[1,32], index: 6, kind: input, shape index: {}]   ;;  %s1535_s7 = inlined_call_operand.hbm [shape: f32[2,8,16,32], index: 7, kind: output, shape index: {}]  }
   0x1   :  { %14 = vsyncpa [#allocation4 + $0x1], 0  ;;  %s1217_s24 = smov 0   ;;  %s1219_s25 = smov 0  }
   0x2   :  { %s1221_s26 = smov 0   ;;  %s1223_s27 = smov 0  }
   0x3   :  { %s1225_s28 = smov 0   ;;  %s1227_s29 = smov 0  }
   0x4   :  { %s1229_s30 = smov 0   ;;  %s1231_s8 = smov 0  }
   0x5 LB: > { %1543 = sst [smem:[#allocation6_spill]] %s1151_s26  ;;  %s911_s9 = sadd.s32 4294967295, %s1171_s8   ;;  %s1171_s8 = sphi %s1231_s8, %s20_s8   ;;  %s1167_s30 = sphi %s1229_s30, %s1559_s30   ;;  %s1163_s29 = sphi %s1227_s29, %s1558_s29   ;;  %s1159_s28 = sphi %s1225_s28, %s1557_s28   ;;  %s1155_s27 = sphi %s1223_s27, %s1556_s27   ;;  %s1151_s26 = sphi %s1221_s26, %s1555_s26   ;;  %s1147_s25 = sphi %s1219_s25, %s1561_s25   ;;  %s1143_s24 = sphi %s1217_s24, %s1560_s24  }
   0x6   : > { %1544 = sst [smem:[#allocation7_spill]] %s1163_s29  ;;  %s912_s10 = sadd.s32 4294967294, %s1171_s8  }
   0x7   : > { %1545 = sst [smem:[#allocation8_spill]] %s1167_s30  ;;  %s29_s11 = sadd.s32 1, %s1163_s29 }
   0x8   : > { %p30_p0 = scmp.ge.s32.totalorder %s29_s11, 8  ;;  %s32_s12 = sadd.s32 1, %s1167_s30 }
   0x9   : > { %p215_p1 = scmp.ne.s32.totalorder %s1151_s26, %s1147_s25  ;;  %p216_p2 = scmp.eq.s32.totalorder %s911_s9, 15 }
   0xa   : > { %s1563_s11 = smov (%p30_p0, %s29_s11), 0  ;;  %s1565_s12 = smov (!%p30_p0, %s32_s12), %s1167_s30 }
   0xb   : > { %1546 = sst [smem:[#allocation9_spill]] %s1563_s11  ;;  %s201_s13 = ssub.s32 %s1163_s29, %s1563_s11 }
   0xc   : > { %p1268_p3 = por %p216_p2, %p215_p1  ;;  %p34_p4 = scmp.ge.s32.totalorder %s1565_s12, 2 }
   0xd   : > { %p221_p5 = scmp.ne.s32.totalorder %s1147_s25, %s1143_s24  ;;  %p222_p6 = scmp.eq.s32.totalorder %s912_s10, 15 }
   0xe   : > { %p915_p7 = scmp.ge.s32.totalorder %s1171_s8, 1  ;;  %s1567_s12 = smov (%p34_p4, %s1565_s12), 0 }
   0xf   : > { %1548 = sst [smem:[#allocation10_spill]] %s1567_s12  ;;  %p1277_p8 = por %p222_p6, %p221_p5 }
  0x10   : > { %p280_p9 = scmp.lt.s32.totalorder %s1171_s8, 17  ;;  %s200_s16 = ssub.s32 %s1167_s30, %s1567_s12 }
  0x11   : > { %s1549_s15 = scalar_select %p1277_p8, 1, 0 }
  0x12   : > { %s205_s17 = sadd.s32 1, %s1151_s26  ;;  %s202_s18 = sor.u32 %s201_s13, %s200_s16 }
  0x13   : > { %1550 = sst [smem:[#allocation11_spill]] %s1549_s15  ;;  %p281_p10 = pnand %p915_p7, %p280_p9 }
  0x14   : > { %p203_p11 = scmp.eq.s32.totalorder %s202_s18, 0  ;;  %s1541_s20 = sand.u32 (!%p281_p10), 1, %s1147_s25  }
  0x15   : > { %284 = sbr.rel (%p281_p10) target bundleno = 1151 (0x47f), region = 48  ;;  %p326_p12 = scmp.lt.s32.totalorder (!%p281_p10), %s1159_s28, 1 }
  0x16   : > { %s1286_s19 = scalar_select %p203_p11, %s1151_s26, %s205_s17  }
  0x17   : > { %s916_s21 = sshll.u32 (!%p281_p10), %s1541_s20, 4  ;;  %p333_p13 = scmp.lt.s32.totalorder (!%p281_p10), %s1155_s27, 7 }
  0x18   : > { %1551 = sst [smem:[#allocation12_spill]] %s1286_s19  ;;  %s1306_s15 = scalar_lea.vmem (!%p281_p10), [#allocation3], %s916_s21 }
  0x19   : > { %p924_p0 = scmp.ne.s32.totalorder (!%p281_p10), %s1155_s27, 0 }
  0x1a   : > { %s327_s22 = scalar_select %p326_p12, %s1159_s28, 1 }
  0x1b   : > { %s334_s23 = scalar_select %p333_p13, %s1155_s27, 7 }
  0x1c   : > { %s979_s9 = sshll.u32 %s327_s22, 4  ;;  %348 = sbr.rel (%p924_p0) target bundleno = 36 (0x24), region = 52 }
  0x1d   : > { %s1298_s16 = scalar_lea.vmem %s1528_s0, %s979_s9  ;;  %s919_s17 = sshll.u32 %s334_s23, 1 }
  0x1e   : > { %s337_s18 = sadd.s32 %s979_s9, %s919_s17  ;;  %s344_s30 = scalar_lea.vmem %s1530_s2, %s979_s9 }
  0x1f   : > { %s921_s29 = sshll.u32 %s337_s18, 3 }
  0x20   : > { %s339_s20 = scalar_lea.vmem %s1529_s1, %s921_s29 }
  0x21   : > { %v349_v0 = vld [vmem:[%s344_s30] sm:$0xff]  ;;  %vm351_vm0 = vcmask 261120   ;;  %v350_v1 = vld [vmem:[%s344_s30 + $0x8] sm:$0xff] }
  0x22   : > { %352 = vst.msk [vmem:[#allocation2] sm:$0xff] %vm351_vm0, %v349_v0 }
  0x23   : > { %353 = vst.msk [vmem:[#allocation2 + $0x8] sm:$0xff] %vm351_vm0, %v350_v1 }
  0x24 PF: > { %v357_v2 = vld [vmem:[%s339_s20 + $0x8] sm:$0xff]  ;;  %s1173_s22 = smov 32   ;;  %v356_v3 = vld [vmem:[%s339_s20] sm:$0xff]  ;;  %vm446_vm1 = vcmask 1043456   ;;  %v931_v6 = vld [vmem:[%s1531_s3 + $0x38] sm:$0xff]  ;;  %vm368_vm2 = vcmask 261120  }
  0x25   : > { %364 = vrot.lane.b32.xlu0 %v357_v2, %s1173_s22  ;;  %v933_v4 = vld [vmem:[%s1531_s3 + $0x48] sm:$0xf]  ;;  %v932_v5 = vld [vmem:[%s1531_s3 + $0x40] sm:$0xff]  ;;  %v930_v7 = vld [vmem:[%s1531_s3 + $0x30] sm:$0xff]  ;;  %vm371_vm3 = vcmask 130048   ;;  %vm439_vm4 = vcmask 293888  }
  0x26   : > { %934 = vmatpush.msk.msra.mxu2 %vm446_vm1, %v933_v4  ;;  %v1334_v13 = vld [vmem:[%s1298_s16] sm:$0xff]  ;;  %v1342_v15 = vld [vmem:[%s1298_s16 + $0x8] sm:$0xff]  ;;  %v431_v20 = vld [vmem:[%s1531_s3 + $0x18] sm:$0xff]  ;;  %s1174_s11 = smov 96   ;;  %s974_s12 = sshll.u32 %s1155_s27, 1 }
  0x27   : > { %v929_v16 = vld [vmem:[%s1531_s3 + $0x28] sm:$0xff]  ;;  %v432_v19 = vld [vmem:[%s1531_s3 + $0x20] sm:$0xf]  ;;  %v430_v21 = vld [vmem:[%s1531_s3 + $0x10] sm:$0xff]  ;;  %s975_s26 = sshll.u32 %s1159_s28, 4  ;;  %s799_s27 = sshll.u32 %s1306_s15, 4  ;;  %s800_s27 = int_to_ptr.vmem [resolvable:$true] %s799_s27 }
  0x28   : > { %462 = vmatpush.msra.mxu2 %v932_v5  ;;  %v429_v22 = vld [vmem:[%s1531_s3 + $0x8] sm:$0xff]  ;;  %v428_v23 = vld [vmem:[%s1531_s3] sm:$0xff]  ;;  %v944_v24 = vld [vmem:[%s1531_s3 + $0x70] sm:$0xf]  ;;  %s796_s29 = sadd.s32 %s975_s26, %s974_s12  ;;  %s1552_s23 = sand.u32 1, %s1147_s25  }
  0x29   : > { %v1329_v11 = vld [vmem:[#allocation2] sm:$0xff]  ;;  %v943_v25 = vld [vmem:[%s1531_s3 + $0x68] sm:$0xff]  ;;  %v941_v27 = vld [vmem:[%s1531_s3 + $0x58] sm:$0xff]  ;;  %s976_s30 = sshll.u32 %s796_s29, 3  ;;  %s785_s9 = scalar_lea.sflag [#allocation4], %s1552_s23 }
  0x2a   : > { %463 = vmatpush.msra.mxu2 %v931_v6  ;;  %v1322_v8 = vld [vmem:[#allocation2 + $0x8] sm:$0xff]  ;;  %v942_v26 = vld [vmem:[%s1531_s3 + $0x60] sm:$0xff]  ;;  %v940_v28 = vld [vmem:[%s1531_s3 + $0x50] sm:$0xff]  ;;  %s798_s20 = scalar_lea.hbm %s1535_s7, %s976_s30  ;;  %s1097_s18 = scalar_lea.hbm %s1535_s7, 256 }
  0x2b   : > { %v1063_v38 = vld [vmem:[%s1532_s4] ss:$0 sm:$0xff]  ;;  %s801_s28 = sshll.u32 %s798_s20, 4  ;;  %s802_s28 = int_to_ptr.hbm [resolvable:$true] %s801_s28 }
  0x2c   : > { %464 = vmatpush.msra.mxu2 %v930_v7  ;;  %s1091_s10 = sshra.s32 %s802_s28, 4  ;;  %s1092_s10 = int_to_ptr.hbm [resolvable:$true] %s1091_s10 }
  0x2d   : > { %362 = vrot.lane.b32.xlu0 %v356_v3, %s1173_s22  ;;  %s1093_s13 = scalar_lea.hbm %s1092_s10, 16  ;;  %p1098_p5 = scmp.lt.s32.totalorder %s1092_s10, %s1535_s7 }
  0x2e   : > { %465 = vmatpush.msra.mxu2 %v929_v16  ;;  %v655_v16 = vld [vmem:[%s1533_s5 + $0x20] sm:$0xf]  ;;  %p1094_p1 = scmp.ne.s32.totalorder %s1092_s10, %s1093_s13  ;;  %p1099_p6 = scmp.lt.s32.totalorder %s1097_s18, %s1093_s13 }
  0x30   : > { %p1095_p2 = pnand %p1094_p1, %p1268_p3  ;;  %p1100_p7 = por %p1099_p6, %p1098_p5 }
  0x32   : > { %p1096_p4 = pneg %p1095_p2 }
  0x34   : > { %p1101_p9 = pnand %p1100_p7, %p1096_p4 }
  0x97   : > { %v1324_v9 = vpop.permute.xlu0 %364 }
  0x98   : > { %v370_v10 = vsel %vm368_vm2, %v1322_v8, %v1324_v9 }
  0x99   : > { %392 = vmatpush.msra.mxu0 %v370_v10 }
  0x9f   : > { %v1331_v12 = vpop.permute.xlu0 %362 }
  0xa0   : > { %v369_v14 = vsel %vm368_vm2, %v1329_v11, %v1331_v12 }
  0xa1   : > { %393 = vmatpush.msra.mxu0 %v369_v14 }
  0xa2   : > { %925 = vmatmul.msk.f32.vlgmr.msra.gmra.mxu0 %vm371_vm3, %v1334_v13 }
  0xa3   : > { %945 = vmatpush.msk.msrb.mxu0 %vm446_vm1, %v944_v24  ;;  %v955_v24 = vld [vmem:[%s1533_s5 + $0x30] sm:$0xff] }
  0xa5   : > { %532 = vmatpush.msrb.mxu0 %v943_v25 }
  0xa7   : > { %533 = vmatpush.msrb.mxu0 %v942_v26 }
  0xa9   : > { %534 = vmatpush.msrb.mxu0 %v941_v27 }
  0xaa   : > { %926 = vmatmul.msk.f32.gmra.mxu0 %vm371_vm3, %v1342_v15 }
  0xab   : > { %535 = vmatpush.msrb.mxu0 %v940_v28 }
  0xad   : > { %962 = vmatpush.msk.msra.mxu0 %vm446_vm1, %v655_v16 }
 0x11f   : > { %v395_v17 = vpop.f32.mrf.mxu0 }
 0x120   : > { %935 = vmatmul.msk.f32.vlgmr.msra.gmra.mxu2 %vm439_vm4, %v395_v17 }
 0x127   : > { %v398_v18 = vpop.f32.mrf.mxu0 }
 0x128   : > { %415 = vmatpush.msra.mxu1 %v398_v18  ;;  %981 = vmatpush.msra.mxu3 %v398_v18 }
 0x129   : > { %936 = vmatmul.msk.f32.gmra.mxu2 %vm439_vm4, %v398_v18  ;;  %v653_v18 = vld [vmem:[%s1533_s5 + $0x10] sm:$0xff] }
 0x12a   : > { %416 = vmatpush.msra.mxu1 %v395_v17  ;;  %982 = vmatpush.msra.mxu3 %v395_v17  ;;  %v654_v17 = vld [vmem:[%s1533_s5 + $0x18] sm:$0xff] }
 0x12b   : > { %927 = vmatmul.msk.f32.vlgmr.msra.gmra.mxu1 %vm371_vm3, %v1334_v13  ;;  %928 = vmatmul.msk.f32.vlgmr.msra.gmra.mxu3 %vm371_vm3, %v1342_v15 }
 0x12c   : > { %937 = vmatpush.msk.msrb.mxu3 %vm446_vm1, %v432_v19  ;;  %715 = vmatpush.msra.mxu0 %v654_v17  ;;  %v652_v19 = vld [vmem:[%s1533_s5 + $0x8] sm:$0xff] }
 0x12e   : > { %494 = vmatpush.msrb.mxu3 %v431_v20  ;;  %716 = vmatpush.msra.mxu0 %v653_v18  ;;  %v651_v20 = vld [vmem:[%s1533_s5] sm:$0xff] }
 0x130   : > { %495 = vmatpush.msrb.mxu3 %v430_v21  ;;  %717 = vmatpush.msra.mxu0 %v652_v19  ;;  %v958_v21 = vld [vmem:[%s1533_s5 + $0x48] sm:$0xf] }
 0x132   : > { %496 = vmatpush.msrb.mxu3 %v429_v22  ;;  %718 = vmatpush.msra.mxu0 %v651_v20  ;;  %v957_v22 = vld [vmem:[%s1533_s5 + $0x40] sm:$0xff] }
 0x134   : > { %497 = vmatpush.msrb.mxu3 %v428_v23  ;;  %v956_v23 = vld [vmem:[%s1533_s5 + $0x38] sm:$0xff] }
 0x135   : > { %938 = vmatmul.msk.f32.vlgmr.msrb.gmra.mxu3 %vm439_vm4, %v369_v14 }
 0x136   : > { %959 = vmatpush.msk.msra.mxu3 %vm446_vm1, %v958_v21 }
 0x138   : > { %683 = vmatpush.msra.mxu3 %v957_v22 }
 0x13a   : > { %684 = vmatpush.msra.mxu3 %v956_v23 }
 0x13c   : > { %685 = vmatpush.msra.mxu3 %v955_v24 }
 0x13d   : > { %939 = vmatmul.msk.f32.gmra.mxu3 %vm439_vm4, %v370_v10 }
 0x1a3   : > { %v467_v36 = vpop.f32.mrf.mxu2 }
 0x1a8   : > { %v418_v29 = vpop.f32.mrf.mxu1 }
 0x1a9   : > { %v424_v30 = vmul.f32 2.0, %v418_v29 }
 0x1ab   : > { %v426_v31 = vsub.f32 %v424_v30, %v369_v14 }
 0x1ac   : > { %v470_v44 = vpop.f32.mrf.mxu2 }
 0x1ad   : > { %946 = vmatmul.msk.f32.vlgmr.msrb.gmra.mxu0 %vm439_vm4, %v426_v31 }
 0x1ae   : > { %v421_v32 = vpop.f32.mrf.mxu3 }
 0x1af   : > { %v425_v33 = vmul.f32 2.0, %v421_v32 }
 0x1b1   : > { %v427_v34 = vsub.f32 %v425_v33, %v370_v10  ;;  %v967_v33 = vld [vmem:[%s1533_s5 + $0x60] sm:$0xff] }
 0x1b5   : > { %947 = vmatmul.msk.f32.gmra.mxu0 %vm439_vm4, %v427_v34  ;;  %v965_v34 = vld [vmem:[%s1533_s5 + $0x50] sm:$0xff] }
 0x1b8   : > { %v499_v35 = vpop.f32.mrf.mxu3 }
 0x1b9   : > { %v500_v37 = vadd.f32 %v499_v35, %v467_v36 }
 0x1c0   : > { %v502_v42 = vpop.f32.mrf.mxu3 }
 0x1c1   : > { %v503_v45 = vadd.f32 %v502_v42, %v470_v44  ;;  %v1064_v44 = vld [vmem:[%s1534_s6] ss:$0 sm:$0xff] }
 0x22a   : > { %v537_v39 = vpop.f32.mrf.mxu0 }
 0x22b   : > { %v543_v40 = vadd.f32 %v537_v39, %v500_v37 }
 0x22d   : > { %v549_v41 = vadd.f32 %v1063_v38, %v543_v40 }
 0x22f   : > { %v948_v43 = vmul.f32 -1.442695, %v549_v41 }
 0x231   : > { %1065 = vpow2.f32 %v948_v43 }
 0x232   : > { %v540_v46 = vpop.f32.mrf.mxu0 }
 0x233   : > { %v544_v47 = vadd.f32 %v540_v46, %v503_v45 }
 0x235   : > { %v550_v48 = vadd.f32 %v1063_v38, %v544_v47 }
 0x237   : > { %v1066_v49 = vpop.eup %1065  ;;  %v949_v50 = vmul.f32 -1.442695, %v550_v48 }
 0x238   : > { %v557_v51 = vadd.f32 1.0, %v1066_v49 }
 0x239   : > { %1067 = vpow2.f32 %v949_v50 }
 0x23a   : > { %1069 = vrcp.f32 %v557_v51  ;;  %v570_v5 = vand.u32 2147483648, %v557_v51  ;;  %vm564_vm10 = vweird.f32 %v557_v51  ;;  %v568_v6 = vand.u32 2147483647, %v557_v51 }
 0x23c   : > { %v571_v10 = vor.u32 1.1754944e-38, %v570_v5  ;;  %vm569_vm12 = vcmp.eq.f32.partialorder %v568_v6, 8.507059e+37 }
 0x23f   : > { %v1068_v52 = vpop.eup %1067 }
 0x240   : > { %v558_v53 = vadd.f32 1.0, %v1068_v52  ;;  %v1070_v54 = vpop.eup %1069 }
 0x241   : > { %v560_v55 = vmul.f32 %v1070_v54, %v557_v51  ;;  %vm565_vm9 = vweird.f32 %v1070_v54 }
 0x242   : > { %1071 = vrcp.f32 %v558_v53  ;;  %v585_v60 = vand.u32 2147483648, %v558_v53  ;;  %v583_v62 = vand.u32 2147483647, %v558_v53  ;;  %vm579_vm6 = vweird.f32 %v558_v53  ;;  %vm566_vm11 = vmor %vm564_vm10, %vm565_vm9 }
 0x243   : > { %v561_v59 = vsub.f32 1.0, %v560_v55 }
 0x244   : > { %v586_v1 = vor.u32 1.1754944e-38, %v585_v60  ;;  %vm584_vm8 = vcmp.eq.f32.partialorder %v583_v62, 8.507059e+37 }
 0x245   : > { %v562_v0 = vmul.f32 %v1070_v54, %v561_v59 }
 0x247   : > { %v563_v4 = vadd.f32 %v1070_v54, %v562_v0 }
 0x248   : > { %v1072_v56 = vpop.eup %1071 }
 0x249   : > { %v575_v57 = vmul.f32 %v1072_v56, %v558_v53  ;;  %vm580_vm5 = vweird.f32 %v1072_v56  ;;  %v567_v7 = vsel %vm566_vm11, %v1070_v54, %v563_v4 }
 0x24a   : > { %vm581_vm7 = vmor %vm579_vm6, %vm580_vm5  ;;  %v1397_v14 = vsel %vm569_vm12, %v571_v10, %v567_v7 }
 0x24b   : > { %v576_v58 = vsub.f32 1.0, %v575_v57 }
 0x24d   : > { %v577_v61 = vmul.f32 %v1072_v56, %v576_v58 }
 0x24f   : > { %v578_v63 = vadd.f32 %v1072_v56, %v577_v61 }
 0x251   : > { %v582_v2 = vsel %vm581_vm7, %v1072_v56, %v578_v63 }
 0x252   : > { %v1394_v3 = vsel %vm584_vm8, %v586_v1, %v582_v2 }
 0x253   : > { %593 = vrot.lane.b32.xlu1 %v1394_v3, %s1174_s11 }
 0x25b   : > { %591 = vrot.lane.b32.xlu1 %v1397_v14, %s1174_s11 }
 0x2c5   : > { %v594_v25 = vpop.permute.xlu1 %593 }
 0x2c6   : > { %v598_v26 = vmul.f32 %v594_v25, %v1322_v8 }
 0x2c8   : > { %v600_v27 = vsel %vm368_vm2, %v598_v26, %v1324_v9  ;;  %v954_v9 = vld [vmem:[%s1533_s5 + $0x28] sm:$0xff] }
 0x2c9   : > { %615 = vmatpush.msrb.mxu1 %v600_v27  ;;  %686 = vmatpush.msra.mxu3 %v954_v9 }
 0x2cd   : > { %v592_v28 = vpop.permute.xlu1 %591 }
 0x2ce   : > { %v597_v29 = vmul.f32 %v592_v28, %v1329_v11 }
 0x2d0   : > { %v599_v30 = vsel %vm368_vm2, %v597_v29, %v1331_v12  ;;  %v969_v12 = vld [vmem:[%s1533_s5 + $0x70] sm:$0xf] }
 0x2d1   : > { %616 = vmatpush.msrb.mxu1 %v599_v30  ;;  %963 = vmatmul.msk.f32.vlgmr.msra.gmra.mxu0 %vm439_vm4, %v599_v30 }
 0x2d2   : > { %950 = vmatmul.msk.f32.vlgmr.msrb.gmra.mxu1 %vm371_vm3, %v1334_v13 }
 0x2d3   : > { %970 = vmatpush.msk.msra.mxu1 %vm446_vm1, %v969_v12 }
 0x2da   : > { %951 = vmatmul.msk.f32.gmra.mxu1 %vm371_vm3, %v1342_v15 }
 0x34e   : > { %v720_v42 = vpop.f32.mrf.mxu0 }
 0x34f   : > { %v618_v31 = vpop.f32.mrf.mxu1 }
 0x350   : > { %960 = vmatmul.msk.f32.vlgmr.msra.gmra.mxu3 %vm439_vm4, %v618_v31 }
 0x357   : > { %v621_v32 = vpop.f32.mrf.mxu1 }
 0x358   : > { %638 = vmatpush.msrb.mxu2 %v621_v32  ;;  %961 = vmatmul.msk.f32.gmra.mxu3 %vm439_vm4, %v621_v32 }
 0x35a   : > { %639 = vmatpush.msrb.mxu2 %v618_v31 }
 0x35b   : > { %952 = vmatmul.msk.f32.vlgmr.msrb.gmra.mxu2 %vm371_vm3, %v1334_v13  ;;  %v968_v13 = vld [vmem:[%s1533_s5 + $0x68] sm:$0xff] }
 0x35c   : > { %983 = vmatpush.msk.msra.mxu2 %vm446_vm1, %v655_v16  ;;  %753 = vmatpush.msra.mxu1 %v968_v13 }
 0x35e   : > { %984 = vmatpush.msra.mxu2 %v654_v17  ;;  %754 = vmatpush.msra.mxu1 %v967_v33 }
 0x360   : > { %985 = vmatpush.msra.mxu2 %v653_v18 }
 0x362   : > { %986 = vmatpush.msra.mxu2 %v652_v19 }
 0x363   : > { %953 = vmatmul.msk.f32.gmra.mxu2 %vm371_vm3, %v1342_v15  ;;  %v966_v15 = vld [vmem:[%s1533_s5 + $0x58] sm:$0xff] }
 0x364   : > { %987 = vmatpush.msra.mxu2 %v651_v20  ;;  %755 = vmatpush.msra.mxu1 %v966_v15 }
 0x366   : > { %756 = vmatpush.msra.mxu1 %v965_v34 }
 0x36b   : > { %964 = vmatmul.msk.f32.vlgmr.msra.gmra.mxu2 %vm439_vm4, %v600_v27 }
 0x3d3   : > { %v688_v41 = vpop.f32.mrf.mxu3 }
 0x3d4   : > { %v721_v43 = vadd.f32 %v720_v42, %v688_v41 }
 0x3db   : > { %v691_v49 = vpop.f32.mrf.mxu3 }
 0x3de   : > { %v641_v35 = vpop.f32.mrf.mxu2 }
 0x3df   : > { %v647_v36 = vmul.f32 2.0, %v641_v35 }
 0x3e1   : > { %v649_v37 = vsub.f32 %v647_v36, %v599_v30 }
 0x3e3   : > { %971 = vmatmul.msk.f32.vlgmr.msra.gmra.mxu1 %vm439_vm4, %v649_v37 }
 0x3e6   : > { %v644_v38 = vpop.f32.mrf.mxu2 }
 0x3e7   : > { %v648_v39 = vmul.f32 2.0, %v644_v38 }
 0x3e9   : > { %v650_v40 = vsub.f32 %v648_v39, %v600_v27 }
 0x3eb   : > { %972 = vmatmul.msk.f32.gmra.mxu1 %vm439_vm4, %v650_v40 }
 0x3ee   : > { %v723_v48 = vpop.f32.mrf.mxu2 }
 0x3ef   : > { %v724_v50 = vadd.f32 %v723_v48, %v691_v49 }
 0x460   : > { %v758_v45 = vpop.f32.mrf.mxu1 }
 0x461   : > { %v764_v46 = vadd.f32 %v758_v45, %v721_v43 }
 0x463   : > { %v770_v47 = vadd.f32 %v1064_v44, %v764_v46 }
 0x465   : > { %1073 = vtanh.f32 %v770_v47 }
 0x468   : > { %v761_v51 = vpop.f32.mrf.mxu1 }
 0x469   : > { %v765_v52 = vadd.f32 %v761_v51, %v724_v50 }
 0x46b   : > { %v1074_v53 = vpop.eup %1073  ;;  %v771_v54 = vadd.f32 %v1064_v44, %v765_v52 }
 0x46c   : > { %v774_v55 = vsub.f32 %v1329_v11, %v1074_v53 }
 0x46d   : > { %1075 = vtanh.f32 %v771_v54 }
 0x46e   : > { %v776_v56 = vmul.f32 %v774_v55, %v1397_v14 }
 0x470   : > { %v778_v57 = vadd.f32 %v1074_v53, %v776_v56 }
 0x472   : > { %780 = vst.msk [vmem:[#allocation2] sm:$0xff] %vm368_vm2, %v778_v57 }
 0x473   : > { %v1076_v58 = vpop.eup %1075  ;;  %782 = vst.msk [vmem:[%s1306_s15] sm:$0xff] %vm368_vm2, %v778_v57 }
 0x474   : > { %v775_v11 = vsub.f32 %v1322_v8, %v1076_v58 }
 0x476   : > { %v777_v59 = vmul.f32 %v775_v11, %v1394_v3 }
 0x478   : > { %v779_v60 = vadd.f32 %v1076_v58, %v777_v59 }
 0x47a   : > { %781 = vst.msk [vmem:[#allocation2 + $0x8] sm:$0xff] %vm368_vm2, %v779_v60 }
 0x47b   : > { %783 = vst.msk [vmem:[%s1306_s15 + $0x8] sm:$0xff] %vm368_vm2, %v779_v60 }
 0x47c   : > { %1104 = shalt.err (!%p1101_p9)
}
 0x47d   : > { %s1175_s15 = smov 128   ;;  %s1176_s12 = smov 8  }
 0x47e   : > { %988 = dma.vmem_to_hbm [thread:$0]  (%p1268_p3), %s800_s27, 256, %s802_s28, %s785_s9, %s1175_s15, %s1175_s15, %s1176_s12  }
 0x47f PF: > { %p994_p10 = scmp.ge.s32.totalorder %s1171_s8, 2  ;;  %s816_s29 = sand.u32 1, %s1143_s24  }
 0x480   : > { %s817_s30 = scalar_lea.sflag [#allocation4], %s816_s29 }
 0x481   : > { %p991_p11 = pnand %p994_p10, %p1277_p8 }
 0x483   : > { %p992_p12 = pneg %p991_p11 }
 0x485   : > { %1138 = dma.done.wait (%p992_p12), %s817_s30, 256  }
 0x486   : > { %1140 = vsyncadd (%p992_p12), %s817_s30, 4294967040  ;;  %s20_s8 = sadd.s32 1, %s1171_s8   ;;  %s1554_s19 = sld [smem:[#allocation6_spill]] }
 0x487   : > { %p17_p13 = scmp.ge.s32.totalorder %s20_s8, 18   ;;  %s1555_s26 = sld [smem:[#allocation12_spill]] }
 0x488   : > { %s1556_s27 = sld [smem:[#allocation7_spill]]  ;;  %s1560_s24 = smov %s1147_s25 }
 0x489   : > { %s1557_s28 = sld [smem:[#allocation8_spill]]  ;;  %19 = sbr.rel (!%p17_p13) target bundleno = 5 (0x5), region = 97 }
 0x48a   : > { %s1558_s29 = sld [smem:[#allocation9_spill]] }
 0x48b   : > { %s1559_s30 = sld [smem:[#allocation10_spill]] }
 0x48c   : > { %s1561_s25 = smov %s1554_s19 }
 0x48e   :  { %823 = vsyncpa [#allocation4], 1 }
 0x48f   :  { %825 = vsyncpa [#allocation4 + $0x1], 1 }

</bundles_post_ra>
